<compile_context>
chip_gen: v6e
topology: v6e:2x2x1
jax: 0.10.0
libtpu: 0.0.40
codegen_flags: <defaults>
</compile_context>

<pallas_src>
import math

import jax
import jax.numpy as jnp
from jax.experimental import pallas as pl
from jax.experimental.pallas import tpu as pltpu


def numerical_embedding_kernel(x_ref, w_ref, b_ref, o_ref):
    """VPU-only expand + FMA + ReLU.

    Shapes (per grid step):
      x_ref: [TB, G]    G packed batch scalars per output row (G=1 when D%128==0)
      w_ref: [1, G*D]   weight tiled G times along lanes (f32)
      b_ref: [1, G*D]   bias tiled G times along lanes (f32)
      o_ref: [TB, G*D]  lane-dense output block
    """
    tb, g = x_ref.shape
    gd = o_ref.shape[1]
    d = gd // g

    x = x_ref[...].astype(jnp.float32)                         # [TB, G]

    # Expand: xe[i, gi*D + k] = x[i, gi], built with G-1 ordered selects
    # against static lane thresholds (NaN-safe: no cross-group arithmetic).
    xe = jnp.broadcast_to(x[:, 0:1], (tb, gd))                 # [TB, GD]
    if g > 1:
        lanes = jax.lax.broadcasted_iota(jnp.int32, (1, gd), 1)
        for gi in range(1, g):                                 # static unroll, G <= 32
            xg = jnp.broadcast_to(x[:, gi:gi + 1], (tb, gd))
            xe = jnp.where(lanes >= gi * d, xg, xe)

    y = xe * w_ref[...] + b_ref[...]                           # one vmul + one vadd
    o_ref[...] = jnp.maximum(y, 0.0).astype(o_ref.dtype)       # one vmax


def _round_up(a, m):
    return (a + m - 1) // m * m


def _pick_group(d):
    """Smallest G with (G*D) % 128 == 0, so output rows are lane-dense."""
    if d % 128 == 0:
        return 1
    g = 128 // math.gcd(d, 128)
    if g <= 32 and g * d <= 2048:
        return g
    # TODO(synk): awkward D (e.g. large primes) falls back to lane-sparse
    # masked stores; padding D up to a lane multiple could be added here.
    return 1


def numerical_embedding(x, weight, bias, *, out_dtype=None):
    """
    Args:
      x:      [B, 1] (or [B]) numerical inputs.
      weight: nn.Linear(1, D) weight — any shape with D elements ([D,1], [1,D] or [D]).
      bias:   [D] bias.
      out_dtype: optional output dtype (default: x.dtype; pass bf16 for
                 downstream consumers to halve write bytes).
    Returns:
      [B, D] embeddings, ReLU(x @ W^T + b).
    """
    if x.ndim == 1:
        x = x[:, None]
    assert x.ndim == 2 and x.shape[1] == 1, "x must be [B] or [B, 1]"
    B = x.shape[0]

    w_flat = jnp.asarray(weight, jnp.float32).reshape(-1)   # [D]
    b_flat = jnp.asarray(bias, jnp.float32).reshape(-1)     # [D]
    D = w_flat.shape[0]
    out_dtype = jnp.dtype(x.dtype if out_dtype is None else out_dtype)
    x_item = jnp.dtype(x.dtype).itemsize
    out_item = out_dtype.itemsize

    # Lane-packing factor: pack G consecutive batch rows per output row so the
    # row width G*D is a multiple of 128 lanes (unmasked vst, dense HBM bursts).
    G = _pick_group(D)
    GD = G * D

    # Never drop packing: pad B up to a multiple of G, slice padded rows later.
    B_pad = _round_up(B, G)
    if B_pad != B:
        x = jnp.concatenate([x, jnp.zeros((B_pad - B, 1), x.dtype)], axis=0)
    B2 = B_pad // G

    # Native-dtype x (kernel casts to f32 on load); tiled f32 weight/bias.
    x2 = x.reshape(B2, G)                                    # [B2, G]
    w_tiled = jnp.tile(w_flat[None, :], (1, G))              # [1, GD]
    b_tiled = jnp.tile(b_flat[None, :], (1, G))              # [1, GD]

    # ---- per-generation VMEM budgeting ---------------------------------
    vmem_cap = 64 << 20                                      # safe default (v7x)
    try:
        info = pltpu.get_tpu_info()
        vmem_cap = int(getattr(info, "vmem_capacity_bytes", vmem_cap))
    except Exception:
        pass
    vmem_limit = int(min(vmem_cap - (8 << 20), 100 << 20))   # 100 MiB v5e/v6e, 56 MiB v7x
    vmem_limit = max(vmem_limit, 32 << 20)

    # Per-row working set: double-buffered output tile (real out itemsize) +
    # ~two full-tile f32 in-kernel temporaries (xe, y) + double-buffered x.
    row_ws = GD * (2 * out_item + 8) + G * 2 * x_item
    tile_budget = int(0.55 * vmem_limit)
    tb_cap = max(8, (tile_budget // row_ws) // 8 * 8)
    tb = B2 if tb_cap >= B2 else tb_cap                      # full extent is always legal

    # v7x has 2 TensorCores: with a single grid step one core sits idle, so
    # split into >= 2 tiles when the batch is big enough (cheap elsewhere).
    if B2 >= 16 and pl.cdiv(B2, tb) < 2:
        tb = max(8, _round_up(pl.cdiv(B2, 2), 8))
    grid = (pl.cdiv(B2, tb),)

    cost = pl.CostEstimate(
        flops=2 * B2 * GD,
        transcendentals=0,
        bytes_accessed=B2 * G * x_item + 2 * GD * 4 + B2 * GD * out_item,
    )

    out2 = pl.pallas_call(
        numerical_embedding_kernel,
        out_shape=jax.ShapeDtypeStruct((B2, GD), out_dtype),
        grid_spec=pltpu.PrefetchScalarGridSpec(
            num_scalar_prefetch=0,
            grid=grid,
            in_specs=[
                pl.BlockSpec((tb, G), lambda i: (i, 0)),     # x tiles over rows
                pl.BlockSpec((1, GD), lambda i: (0, 0)),     # weight stays resident
                pl.BlockSpec((1, GD), lambda i: (0, 0)),     # bias stays resident
            ],
            out_specs=pl.BlockSpec((tb, GD), lambda i: (i, 0)),
        ),
        compiler_params=pltpu.CompilerParams(
            dimension_semantics=("parallel",),               # shard tiles across TCs (v7x)
            vmem_limit_bytes=vmem_limit,
        ),
        cost_estimate=cost,
    )(x2, w_tiled, b_tiled)

    # Free row-major view back to [B_pad, D]; slice off padded rows if any.
    out = out2.reshape(B_pad, D)
    if B_pad != B:
        out = out[:B]
    return out


if __name__ == "__main__":
    key = jax.random.PRNGKey(0)
    k_x, k_w, k_b = jax.random.split(key, 3)

    batch = 8
    embedding_dim = 32

    # nn.Linear(1, embedding_dim): weight [embedding_dim, 1], bias [embedding_dim].
    weight = jax.random.normal(k_w, (embedding_dim, 1), dtype=jnp.float32) * 0.5
    bias = jax.random.normal(k_b, (embedding_dim,), dtype=jnp.float32) * 0.1

    # Numerical inputs [batch, 1] (module also accepts [batch]; wrapper unsqueezes).
    x = jax.random.normal(k_x, (batch, 1), dtype=jnp.float32)

    out = numerical_embedding(x, weight, bias)
    out = jax.block_until_ready(out)

    # Reference in plain JAX: ReLU(x @ W^T + b).
    ref = jnp.maximum(x @ weight.T + bias[None, :], 0.0)
    assert out.shape == (batch, embedding_dim)
    assert jnp.allclose(out, ref, atol=1e-5, rtol=1e-5), float(jnp.max(jnp.abs(out - ref)))

    print("KERNEL_OK")
</pallas_src>

<mosaic_0001>
module attributes {stable_mosaic.version = 11 : i64} {
  func.func @numerical_embedding_kernel(%arg0: i32, %arg1: memref<2x4xf32, #tpu.memory_space<vmem>>, %arg2: memref<1x128xf32, #tpu.memory_space<vmem>>, %arg3: memref<1x128xf32, #tpu.memory_space<vmem>>, %arg4: memref<2x128xf32, #tpu.memory_space<vmem>>) attributes {dimension_semantics = [#tpu.dimension_semantics<parallel>], iteration_bounds = array<i64: 1>, scalar_prefetch = 0 : i64, scratch_operands = 0 : i64, tpu.core_type = #tpu.core_type<tc>, window_params = [{transform_indices = @transform_0, window_bounds = array<i64: 2, 4>}, {pipeline_mode = #tpu.pipeline_mode<synchronous>, transform_indices = @transform_1, window_bounds = array<i64: 1, 128>}, {pipeline_mode = #tpu.pipeline_mode<synchronous>, transform_indices = @transform_2, window_bounds = array<i64: 1, 128>}, {transform_indices = @transform_3, window_bounds = array<i64: 2, 128>}]} {
    %c0 = arith.constant 0 : index
    %c0_0 = arith.constant 0 : index
    %0 = vector.load %arg1[%c0, %c0_0] : memref<2x4xf32, #tpu.memory_space<vmem>>, vector<2x4xf32>
    %1 = vector.extract_strided_slice %0 {offsets = [0, 0], sizes = [2, 1], strides = [1, 1]} : vector<2x4xf32> to vector<2x1xf32>
    %2 = vector.shape_cast %1 : vector<2x1xf32> to vector<2x1xf32>
    %3 = vector.broadcast %2 : vector<2x1xf32> to vector<2x128xf32>
    %4 = tpu.iota {dimensions = array<i32: 1>} : vector<1x128xi32>
    %5 = vector.extract_strided_slice %0 {offsets = [0, 1], sizes = [2, 1], strides = [1, 1]} : vector<2x4xf32> to vector<2x1xf32>
    %6 = vector.shape_cast %5 : vector<2x1xf32> to vector<2x1xf32>
    %7 = vector.broadcast %6 : vector<2x1xf32> to vector<2x128xf32>
    %c32_i32 = arith.constant 32 : i32
    %8 = vector.broadcast %c32_i32 : i32 to vector<1x128xi32>
    %9 = arith.cmpi sge, %4, %8 : vector<1x128xi32>
    %10 = vector.shape_cast %9 : vector<1x128xi1> to vector<1x128xi1>
    %11 = vector.broadcast %10 : vector<1x128xi1> to vector<2x128xi1>
    %12 = arith.select %11, %7, %3 : vector<2x128xi1>, vector<2x128xf32>
    %13 = vector.extract_strided_slice %0 {offsets = [0, 2], sizes = [2, 1], strides = [1, 1]} : vector<2x4xf32> to vector<2x1xf32>
    %14 = vector.shape_cast %13 : vector<2x1xf32> to vector<2x1xf32>
    %15 = vector.broadcast %14 : vector<2x1xf32> to vector<2x128xf32>
    %c64_i32 = arith.constant 64 : i32
    %16 = vector.broadcast %c64_i32 : i32 to vector<1x128xi32>
    %17 = arith.cmpi sge, %4, %16 : vector<1x128xi32>
    %18 = vector.shape_cast %17 : vector<1x128xi1> to vector<1x128xi1>
    %19 = vector.broadcast %18 : vector<1x128xi1> to vector<2x128xi1>
    %20 = arith.select %19, %15, %12 : vector<2x128xi1>, vector<2x128xf32>
    %21 = vector.extract_strided_slice %0 {offsets = [0, 3], sizes = [2, 1], strides = [1, 1]} : vector<2x4xf32> to vector<2x1xf32>
    %22 = vector.shape_cast %21 : vector<2x1xf32> to vector<2x1xf32>
    %23 = vector.broadcast %22 : vector<2x1xf32> to vector<2x128xf32>
    %c96_i32 = arith.constant 96 : i32
    %24 = vector.broadcast %c96_i32 : i32 to vector<1x128xi32>
    %25 = arith.cmpi sge, %4, %24 : vector<1x128xi32>
    %26 = vector.shape_cast %25 : vector<1x128xi1> to vector<1x128xi1>
    %27 = vector.broadcast %26 : vector<1x128xi1> to vector<2x128xi1>
    %28 = arith.select %27, %23, %20 : vector<2x128xi1>, vector<2x128xf32>
    %c0_1 = arith.constant 0 : index
    %c0_2 = arith.constant 0 : index
    %29 = vector.load %arg2[%c0_1, %c0_2] : memref<1x128xf32, #tpu.memory_space<vmem>>, vector<1x128xf32>
    %30 = vector.broadcast %29 : vector<1x128xf32> to vector<2x128xf32>
    %31 = arith.mulf %28, %30 : vector<2x128xf32>
    %c0_3 = arith.constant 0 : index
    %c0_4 = arith.constant 0 : index
    %32 = vector.load %arg3[%c0_3, %c0_4] : memref<1x128xf32, #tpu.memory_space<vmem>>, vector<1x128xf32>
    %33 = vector.broadcast %32 : vector<1x128xf32> to vector<2x128xf32>
    %34 = arith.addf %31, %33 : vector<2x128xf32>
    %cst = arith.constant 0.000000e+00 : f32
    %35 = vector.broadcast %cst : f32 to vector<2x128xf32>
    %36 = arith.maximumf %34, %35 : vector<2x128xf32>
    %c0_5 = arith.constant 0 : index
    %c0_6 = arith.constant 0 : index
    %37 = vector.load %arg4[%c0_5, %c0_6] : memref<2x128xf32, #tpu.memory_space<vmem>>, vector<2x128xf32>
    tpu.vector_store %arg4[%c0_5, %c0_6], %36 {strides = array<i32>} : memref<2x128xf32, #tpu.memory_space<vmem>>, vector<2x128xf32>,
    return
  }
  func.func @transform_0(%arg0: i32) -> (i32, i32) {
    %c0_i32 = arith.constant 0 : i32
    %c0_i32_0 = arith.constant 0 : i32
    return %arg0, %c0_i32 : i32, i32
  }
  func.func @transform_1(%arg0: i32) -> (i32, i32) {
    %c0_i32 = arith.constant 0 : i32
    %c0_i32_0 = arith.constant 0 : i32
    %c0_i32_1 = arith.constant 0 : i32
    return %c0_i32, %c0_i32_0 : i32, i32
  }
  func.func @transform_2(%arg0: i32) -> (i32, i32) {
    %c0_i32 = arith.constant 0 : i32
    %c0_i32_0 = arith.constant 0 : i32
    %c0_i32_1 = arith.constant 0 : i32
    return %c0_i32, %c0_i32_0 : i32, i32
  }
  func.func @transform_3(%arg0: i32) -> (i32, i32) {
    %c0_i32 = arith.constant 0 : i32
    %c0_i32_0 = arith.constant 0 : i32
    return %arg0, %c0_i32 : i32, i32
  }
}

</mosaic_0001>

<bundles_post_ra>
// kernel: tpu_custom_call.1
= control target key start
LH: loop header
LB: loop body
LE: loop exit
PB: predicated region body
PF: predicated region fallthrough
CT: control target
= control target key end

     0   :  { %8 = vsyncpa [#allocation3], 0  ;;  %s187_s0 = inlined_call_operand.hbm [shape: f32[2,4], index: 0, kind: input, shape index: {}]   ;;  %s188_s1 = inlined_call_operand.vmem [shape: f32[1,128], index: 1, kind: input, shape index: {}]   ;;  %s189_s2 = inlined_call_operand.vmem [shape: f32[1,128], index: 2, kind: input, shape index: {}]   ;;  %s190_s3 = inlined_call_operand.hbm [shape: f32[2,128], index: 3, kind: output, shape index: {}]  }
   0x1   :  { %9 = vsyncpa [#allocation4], 0  ;;  %s149_s12 = smov [#allocation2]  }
   0x2   :  { %s16_s13 = sshll.u32 %s149_s12, 4  ;;  %s17_s13 = int_to_ptr.vmem [resolvable:$true] %s16_s13 }
   0x3   :  { %s113_s14 = scalar_lea.vmem %s17_s13, 32  ;;  %p118_p1 = scmp.lt.s32.totalorder %s17_s13, %s17_s13 }
   0x4   :  { %p114_p0 = scmp.ne.s32.totalorder %s17_s13, %s113_s14  ;;  %p119_p2 = scmp.lt.s32.totalorder %s113_s14, %s113_s14 }
   0x6   :  { %p120_p3 = por %p119_p2, %p118_p1 }
   0x8   :  { %p121_p4 = pnand %p120_p3, %p114_p0 }
   0xa   :  { %124 = shalt.err (!%p121_p4)
}
   0xb   :  { %19 = dma.hbm_to_vmem [thread:$0]  %s187_s0, 32, %s17_s13, [#allocation3]  }
   0xc   :  { %145 = dma.done.wait [#allocation3], 32  }
   0xd   :  { %146 = vsyncadd [#allocation3], 4294967264  ;;  %v150_v0 = vmov 0   ;;  %v151_v1 = vmov 2   ;;  %v27_v2 = vld [vmem:[#allocation2] sm:$0x3]  ;;  %v33_v5 = vlaneseq }
   0xe   :  { %100 = vset.pattern.permute.xlu0 %v150_v0  ;;  %102 = vset.pattern.permute.xlu1 %v151_v1  ;;  %v152_v3 = vmov 1   ;;  %v153_v4 = vmov 3   ;;  %v92_v12 = vld [vmem:[%s188_s1] ss:$0 sm:$0xff]  ;;  %s154_s20 = smov [#allocation5]  }
   0xf   :  { %30 = vperm.xlu0 %100, %v27_v2   ;;  %44 = vperm.xlu1 %102, %v27_v2   ;;  %v34_v6 = vand.u32 127, %v33_v5  ;;  %v93_v15 = vld [vmem:[%s189_s2] ss:$0 sm:$0xff]  ;;  %s83_s21 = sshll.u32 %s154_s20, 4  ;;  %s84_s21 = int_to_ptr.vmem [resolvable:$true] %s83_s21 }
  0x10   :  { %s125_s22 = scalar_lea.vmem %s84_s21, 32  ;;  %p130_p6 = scmp.lt.s32.totalorder %s84_s21, %s84_s21 }
  0x11   :  { %vm39_vm0 = vcmp.ge.s32.totalorder %v34_v6, 32  ;;  %vm47_vm1 = vcmp.ge.s32.totalorder %v34_v6, 64  ;;  %vm55_vm2 = vcmp.ge.s32.totalorder %v34_v6, 96  ;;  %p126_p5 = scmp.ne.s32.totalorder %s84_s21, %s125_s22  ;;  %p131_p7 = scmp.lt.s32.totalorder %s125_s22, %s125_s22 }
  0x13   :  { %101 = vset.pattern.permute.xlu0 %v152_v3  ;;  %103 = vset.pattern.permute.xlu1 %v153_v4  ;;  %p132_p8 = por %p131_p7, %p130_p6 }
  0x14   :  { %36 = vperm.xlu0 %101, %v27_v2   ;;  %52 = vperm.xlu1 %103, %v27_v2  }
  0x15   :  { %p133_p9 = pnand %p132_p8, %p126_p5 }
  0x18   :  { %104 = vset.pattern.permute.xlu0 %v153_v4 }
  0x8a   :  { %v31_v7 = vpop.permute.xlu0 %30  ;;  %v45_v8 = vpop.permute.xlu1 %44 }
  0x8f   :  { %v37_v9 = vpop.permute.xlu0 %36  ;;  %v53_v10 = vpop.permute.xlu1 %52 }
  0x90   :  { %v42_v11 = vsel %vm39_vm0, %v37_v9, %v31_v7 }
  0x91   :  { %v50_v13 = vsel %vm47_vm1, %v45_v8, %v42_v11 }
  0x92   :  { %v58_v14 = vsel %vm55_vm2, %v53_v10, %v50_v13 }
  0x93   :  { %v66_v16 = vmul.f32 %v92_v12, %v58_v14 }
  0x95   :  { %v74_v17 = vadd.f32 %v93_v15, %v66_v16 }
  0x97   :  { %v75_v18 = vmax.f32 %v74_v17, 0.0 }
  0x99   :  { %76 = vst [vmem:[#allocation5] sm:$0x3] %v75_v18 }
  0x9a   :  { %136 = shalt.err (!%p133_p9)
}
  0x9b   :  { %86 = dma.vmem_to_hbm [thread:$0]  %s84_s21, 32, %s190_s3, [#allocation4]  }
  0x9c   :  { %147 = dma.done.wait [#allocation4], 32  }
  0x9d   :  { %148 = vsyncadd [#allocation4], 4294967264 }
  0x9e   :  { %90 = vsyncpa [#allocation3], 1 }
  0x9f   :  { %91 = vsyncpa [#allocation4], 1 }

</bundles_post_ra>
